<compile_context>
chip_gen: v6e
topology: v6e:2x2x1
jax: 0.10.0
libtpu: 0.0.40
codegen_flags: <defaults>
</compile_context>

<pallas_src>
import jax
import jax.numpy as jnp
import numpy as np
from jax.experimental import pallas as pl
from jax.experimental.pallas import tpu as pltpu

BEAM_WIDTH = 5   # kept for fidelity; the reference search is beam-width invariant
BLANK = 0


# ----------------------------------------------------------------------------
# Kernels: one (1, cT, tT) tile per grid step; reduce over the sublane axis C,
# with a running (max, argmax[, sum-exp]) carry across C tiles in VMEM scratch.
# ----------------------------------------------------------------------------
def _argmax_kernel(x_ref, idx_ref, m_sc, idx_sc):
    """Score-free fast path: native-dtype argmax, no exp / lse work at all."""
    c_i = pl.program_id(2)
    x = x_ref[...]                                       # (1, cT, tT), native dtype
    c_blk = x.shape[1]
    ml = jnp.max(x, axis=1, keepdims=True)               # (1, 1, tT)
    cls = jax.lax.broadcasted_iota(jnp.int32, x.shape, dimension=1)
    # first-occurrence local argmax along the sublane (C) axis
    il = jnp.min(jnp.where(x >= ml, cls, c_blk), axis=1)  # (1, tT) int32

    @pl.when(c_i == 0)
    def _():
        m_sc[...] = jnp.full_like(m_sc, -jnp.inf)
        idx_sc[...] = jnp.zeros_like(idx_sc)

    ml32 = ml.astype(jnp.float32)                        # exact; carry stays f32
    better = ml32 > m_sc[...]                            # strict > keeps earlier tile on ties
    idx_sc[...] = jnp.where(better,
                            (il + c_i * c_blk).reshape(idx_sc.shape),
                            idx_sc[...])
    m_sc[...] = jnp.where(better, ml32, m_sc[...])

    @pl.when(c_i == pl.num_programs(2) - 1)
    def _():
        idx_ref[...] = idx_sc[...]


def _argmax_score_kernel(x_ref, idx_ref, nls_ref, m_sc, idx_sc, s_sc):
    """Scored path: d = x - m computed once and reused for mask and exp (lse)."""
    c_i = pl.program_id(2)
    x = x_ref[...].astype(jnp.float32)                   # f32 for exp / lse accuracy
    c_blk = x.shape[1]
    ml = jnp.max(x, axis=1, keepdims=True)               # (1, 1, tT)
    d = x - ml                                           # single (cT, tT) pass, reused
    cls = jax.lax.broadcasted_iota(jnp.int32, x.shape, dimension=1)
    il = jnp.min(jnp.where(d >= 0.0, cls, c_blk), axis=1)       # argmax mask from d
    sl = jnp.sum(jnp.exp(d), axis=1, keepdims=True)      # (1, 1, tT) local sum-exp

    @pl.when(c_i == 0)
    def _():
        m_sc[...] = jnp.full_like(m_sc, -jnp.inf)
        idx_sc[...] = jnp.zeros_like(idx_sc)
        s_sc[...] = jnp.zeros_like(s_sc)

    m_old = m_sc[...]
    m_new = jnp.maximum(m_old, ml)
    # online log-sum-exp across C tiles (tiny (1,1,tT)-sized ops only)
    s_sc[...] = s_sc[...] * jnp.exp(m_old - m_new) + sl * jnp.exp(ml - m_new)
    better = ml > m_old
    idx_sc[...] = jnp.where(better,
                            (il + c_i * c_blk).reshape(idx_sc.shape),
                            idx_sc[...])
    m_sc[...] = m_new

    @pl.when(c_i == pl.num_programs(2) - 1)
    def _():
        idx_ref[...] = idx_sc[...]
        # per-timestep best log-prob: max_c log_softmax(x) = -log(sum exp(x - m))
        nls_ref[...] = -jnp.log(s_sc[...])


# ----------------------------------------------------------------------------
# Wrapper
# ----------------------------------------------------------------------------
def _vmem_target_bytes():
    """Per-block VMEM budget by TPU generation (Pallas double-buffers inputs)."""
    try:
        kind = jax.devices()[0].device_kind.lower()
    except Exception:
        return 4 << 20
    if "v6" in kind:
        return 8 << 20      # 32 MiB scoped default / 128 MiB physical VMEM
    if "v7" in kind:
        return 6 << 20      # 32 MiB scoped default / 64 MiB physical VMEM
    return 4 << 20          # v5e and older: 16 MiB scoped default


def _pick_tiles(C, T, itemsize, target_bytes, t_tile=None, c_tile=None):
    """Pick (c_tile, t_tile): one (1, cT, tT) block <= target_bytes, bf16 DMA
    rows >= 512 B, and block dims respecting the (8, 128) rule."""
    min_tt = 256 if itemsize < 4 else 128
    if t_tile is not None:
        tt = int(t_tile)
    elif T <= min_tt or C * T * itemsize <= target_bytes:
        tt = T
    else:
        budget_tt = (target_bytes // (C * itemsize)) // 128 * 128
        t_pad = -(-T // 128) * 128
        tt = int(min(max(min_tt, budget_tt), t_pad))
    if tt != T and tt % 128 != 0:
        raise ValueError(f"t_tile={tt} must be a multiple of 128 or equal T={T}")

    if c_tile is not None:
        ct = int(c_tile)
    else:
        ct = C
        if C > 8 and C * tt * itemsize > target_bytes:
            want = max(8, (target_bytes // (tt * itemsize)) // 8 * 8)
            cc = (min(want, C) // 8) * 8
            while cc >= 8:
                if C % cc == 0:
                    ct = cc
                    break
                cc -= 8
            # TODO(synk): pad C (with -inf) for vocab sizes with no multiple-of-8 divisor.
    if ct != C and (ct % 8 != 0 or C % ct != 0):
        raise ValueError(f"c_tile={ct} must divide C={C} and be a multiple of 8")
    return ct, tt


def beam_search_pallas(logits, beam_width: int = BEAM_WIDTH,
                       return_scores: bool = True,
                       t_tile: int | None = None, c_tile: int | None = None):
    """Degenerate beam search on TPU, directly on the (N, C, T) layout.

    Returns:
      sequences: (N, T) int32 best-beam token ids.
      scores:    (N,)   float32 best-beam scores, or None if return_scores=False.
    """
    if logits.ndim != 3:
        raise ValueError('Expected a 3D tensor.')
    del beam_width  # the reference search provably degenerates to greedy argmax
    N, C, T = logits.shape
    itemsize = jnp.dtype(logits.dtype).itemsize
    ct, tt = _pick_tiles(C, T, itemsize, _vmem_target_bytes(), t_tile, c_tile)
    nT = pl.cdiv(T, tt)
    nC = pl.cdiv(C, ct)

    in_spec = pl.BlockSpec((1, ct, tt), lambda n, t, c: (n, c, t))
    out_spec = pl.BlockSpec((1, 1, tt), lambda n, t, c: (n, 0, t))  # lane-dense
    scratch = [pltpu.VMEM((1, 1, tt), jnp.float32),    # running max
               pltpu.VMEM((1, 1, tt), jnp.int32)]      # running argmax
    semantics = ("parallel", "parallel", "arbitrary")

    if return_scores:
        idx, neglse = pl.pallas_call(
            _argmax_score_kernel,
            out_shape=(jax.ShapeDtypeStruct((N, 1, T), jnp.int32),
                       jax.ShapeDtypeStruct((N, 1, T), jnp.float32)),
            grid_spec=pltpu.PrefetchScalarGridSpec(
                num_scalar_prefetch=0,
                grid=(N, nT, nC),
                in_specs=[in_spec],
                out_specs=(out_spec, out_spec),
                scratch_shapes=scratch + [pltpu.VMEM((1, 1, tt), jnp.float32)]),
            compiler_params=pltpu.CompilerParams(dimension_semantics=semantics),
        )(logits)
        # tiny (N, T) partial reduction folded in XLA keeps every grid axis parallel
        return idx.reshape(N, T), jnp.sum(neglse, axis=(1, 2))

    idx = pl.pallas_call(
        _argmax_kernel,
        out_shape=jax.ShapeDtypeStruct((N, 1, T), jnp.int32),
        grid_spec=pltpu.PrefetchScalarGridSpec(
            num_scalar_prefetch=0,
            grid=(N, nT, nC),
            in_specs=[in_spec],
            out_specs=out_spec,
            scratch_shapes=scratch),
        compiler_params=pltpu.CompilerParams(dimension_semantics=semantics),
    )(logits)
    return idx.reshape(N, T), None


def ctc_decode(sequences, blank: int = BLANK):
    """CTC collapse: single D2H of the (N, T) int32 ids; keep-mask and the
    ragged list construction are pure host numpy (no extra device pass)."""
    seqs = np.asarray(jax.device_get(sequences))
    prev = np.concatenate(
        [np.full((seqs.shape[0], 1), -1, dtype=seqs.dtype), seqs[:, :-1]], axis=1)
    keep = (seqs != blank) & (seqs != prev)
    # TODO(synk): the ragged list-of-lists output has no fixed-shape Pallas equivalent.
    return [seqs[i][keep[i]].astype(int).tolist() for i in range(seqs.shape[0])]


def beam_ctc_decoder_forward(logits, beam_width: int = BEAM_WIDTH,
                             blank: int = BLANK):
    # forward() only returns decoded sequences -> score-free kernel (no exp/lse).
    sequences, _ = beam_search_pallas(logits, beam_width, return_scores=False)
    return ctc_decode(sequences, blank)


# ----------------------------------------------------------------------------
# Self-test
# ----------------------------------------------------------------------------
def _ref_decode_loop(seqs, blank=BLANK):
    out = []
    for s in np.asarray(seqs):
        prev = None
        d = []
        for tok in s:
            tok = int(tok)
            if tok != blank and tok != prev:
                d.append(tok)
            prev = tok
        out.append(d)
    return out


def _ref_greedy(logits):
    logp = jax.nn.log_softmax(
        jnp.transpose(logits, (0, 2, 1)).astype(jnp.float32), axis=-1)
    return (jnp.argmax(logp, axis=-1).astype(jnp.int32),
            jnp.sum(jnp.max(logp, axis=-1), axis=-1))


if __name__ == "__main__":
    key = jax.random.PRNGKey(0)
    N, C, T = 2, 32, 16
    logits = jax.random.normal(key, (N, C, T), dtype=jnp.float32)

    # --- scored path ---
    seq, score = beam_search_pallas(logits)
    seq, score = jax.block_until_ready((seq, score))
    ref_idx, ref_score = _ref_greedy(logits)
    assert jnp.array_equal(seq, ref_idx), "token mismatch"
    assert jnp.allclose(score, ref_score, atol=1e-4), "score mismatch"

    # --- score-free fast path (native dtype, no exp/lse) ---
    seq2, _ = beam_search_pallas(logits, return_scores=False)
    assert jnp.array_equal(jax.block_until_ready(seq2), ref_idx)

    # --- T-tiled path (multiple lane tiles) ---
    lg = jax.random.normal(jax.random.PRNGKey(1), (N, C, 256), jnp.float32)
    r_idx, r_sc = _ref_greedy(lg)
    s3, sc3 = beam_search_pallas(lg, t_tile=128)
    assert jnp.array_equal(jax.block_until_ready(s3), r_idx)
    assert jnp.allclose(jax.block_until_ready(sc3), r_sc, atol=1e-3)

    # --- C-tiled path (online running max / argmax / sum-exp across C tiles) ---
    s4, sc4 = beam_search_pallas(lg, t_tile=128, c_tile=8)
    assert jnp.array_equal(jax.block_until_ready(s4), r_idx)
    assert jnp.allclose(jax.block_until_ready(sc4), r_sc, atol=1e-3)
    s4b, _ = beam_search_pallas(lg, return_scores=False, t_tile=128, c_tile=8)
    assert jnp.array_equal(jax.block_until_ready(s4b), r_idx)

    # --- ragged T (masked edge tile, no wrapper-side padding copy) ---
    lg2 = jax.random.normal(jax.random.PRNGKey(2), (N, C, 200), jnp.float32)
    r5_idx, r5_sc = _ref_greedy(lg2)
    s5, sc5 = beam_search_pallas(lg2, t_tile=128)
    assert jnp.array_equal(jax.block_until_ready(s5), r5_idx)
    assert jnp.allclose(jax.block_until_ready(sc5), r5_sc, atol=1e-3)

    # --- bf16 input: native-dtype argmax in-kernel (no wrapper upcast) ---
    lgb = logits.astype(jnp.bfloat16)
    s6, _ = beam_search_pallas(lgb, return_scores=False)
    ref6 = jnp.argmax(lgb.astype(jnp.float32), axis=1).astype(jnp.int32)
    assert jnp.array_equal(jax.block_until_ready(s6), ref6), "bf16 token mismatch"

    # --- full module forward (decoded ragged lists) ---
    decoded = beam_ctc_decoder_forward(logits)
    assert isinstance(decoded, list) and len(decoded) == N
    assert decoded == _ref_decode_loop(seq), "CTC collapse mismatch"

    print("KERNEL_OK")
</pallas_src>

<mosaic_0001>
module attributes {stable_mosaic.version = 11 : i64} {
  func.func @_argmax_score_kernel(%arg0: i32, %arg1: i32, %arg2: i32, %arg3: memref<1x32x16xf32, #tpu.memory_space<vmem>>, %arg4: memref<1x1x16xi32, #tpu.memory_space<vmem>>, %arg5: memref<1x1x16xf32, #tpu.memory_space<vmem>>, %arg6: memref<1x1x16xf32, #tpu.memory_space<vmem>>, %arg7: memref<1x1x16xi32, #tpu.memory_space<vmem>>, %arg8: memref<1x1x16xf32, #tpu.memory_space<vmem>>) attributes {dimension_semantics = [#tpu.dimension_semantics<parallel>, #tpu.dimension_semantics<parallel>, #tpu.dimension_semantics<arbitrary>], iteration_bounds = array<i64: 2, 1, 1>, scalar_prefetch = 0 : i64, scratch_operands = 3 : i64, tpu.core_type = #tpu.core_type<tc>, window_params = [{transform_indices = @transform_0, window_bounds = array<i64: 1, 32, 16>}, {transform_indices = @transform_1, window_bounds = array<i64: 1, 1, 16>}, {transform_indices = @transform_2, window_bounds = array<i64: 1, 1, 16>}]} {
    %c0 = arith.constant 0 : index
    %c0_0 = arith.constant 0 : index
    %c0_1 = arith.constant 0 : index
    %0 = vector.load %arg3[%c0, %c0_0, %c0_1] : memref<1x32x16xf32, #tpu.memory_space<vmem>>, vector<1x32x16xf32>
    %cst = arith.constant dense<0xFF800000> : vector<1x16xf32>
    %1 = vector.multi_reduction <maximumf>, %0, %cst [1] : vector<1x32x16xf32> to vector<1x16xf32>
    %2 = vector.shape_cast %1 : vector<1x16xf32> to vector<1x1x16xf32>
    %3 = vector.broadcast %2 : vector<1x1x16xf32> to vector<1x32x16xf32>
    %4 = arith.subf %0, %3 : vector<1x32x16xf32>
    %5 = tpu.iota {dimensions = array<i32: 1>} : vector<1x32x16xi32>
    %cst_2 = arith.constant 0.000000e+00 : f32
    %6 = vector.broadcast %cst_2 : f32 to vector<1x32x16xf32>
    %7 = arith.cmpf oge, %4, %6 : vector<1x32x16xf32>
    %c32_i32 = arith.constant 32 : i32
    %8 = vector.broadcast %c32_i32 : i32 to vector<1x32x16xi32>
    %9 = arith.select %7, %5, %8 : vector<1x32x16xi1>, vector<1x32x16xi32>
    %cst_3 = arith.constant dense<2147483647> : vector<1x16xi32>
    %10 = vector.multi_reduction <minsi>, %9, %cst_3 [1] : vector<1x32x16xi32> to vector<1x16xi32>
    %11 = math.exp %4 : vector<1x32x16xf32>
    %cst_4 = arith.constant dense<0.000000e+00> : vector<1x16xf32>
    %12 = vector.multi_reduction <add>, %11, %cst_4 [1] : vector<1x32x16xf32> to vector<1x16xf32>
    %13 = vector.shape_cast %12 : vector<1x16xf32> to vector<1x1x16xf32>
    %c0_i32 = arith.constant 0 : i32
    %14 = arith.cmpi eq, %arg2, %c0_i32 : i32
    %15 = arith.extui %14 : i1 to i32
    %c0_i32_5 = arith.constant 0 : i32
    %16 = arith.cmpi ne, %15, %c0_i32_5 : i32
    scf.if %16 {
      %cst_27 = arith.constant 0xFF800000 : f32
      %40 = vector.broadcast %cst_27 : f32 to vector<1x1x16xf32>
      %c0_28 = arith.constant 0 : index
      %c0_29 = arith.constant 0 : index
      %c0_30 = arith.constant 0 : index
      %41 = vector.load %arg6[%c0_28, %c0_29, %c0_30] : memref<1x1x16xf32, #tpu.memory_space<vmem>>, vector<1x1x16xf32>
      tpu.vector_store %arg6[%c0_28, %c0_29, %c0_30], %40 {strides = array<i32>} : memref<1x1x16xf32, #tpu.memory_space<vmem>>, vector<1x1x16xf32>,
      %c0_i32_31 = arith.constant 0 : i32
      %42 = vector.broadcast %c0_i32_31 : i32 to vector<1x1x16xi32>
      %c0_32 = arith.constant 0 : index
      %c0_33 = arith.constant 0 : index
      %c0_34 = arith.constant 0 : index
      %43 = vector.load %arg7[%c0_32, %c0_33, %c0_34] : memref<1x1x16xi32, #tpu.memory_space<vmem>>, vector<1x1x16xi32>
      tpu.vector_store %arg7[%c0_32, %c0_33, %c0_34], %42 {strides = array<i32>} : memref<1x1x16xi32, #tpu.memory_space<vmem>>, vector<1x1x16xi32>,
      %cst_35 = arith.constant 0.000000e+00 : f32
      %44 = vector.broadcast %cst_35 : f32 to vector<1x1x16xf32>
      %c0_36 = arith.constant 0 : index
      %c0_37 = arith.constant 0 : index
      %c0_38 = arith.constant 0 : index
      %45 = vector.load %arg8[%c0_36, %c0_37, %c0_38] : memref<1x1x16xf32, #tpu.memory_space<vmem>>, vector<1x1x16xf32>
      tpu.vector_store %arg8[%c0_36, %c0_37, %c0_38], %44 {strides = array<i32>} : memref<1x1x16xf32, #tpu.memory_space<vmem>>, vector<1x1x16xf32>,
    } else {
    }
    %c0_6 = arith.constant 0 : index
    %c0_7 = arith.constant 0 : index
    %c0_8 = arith.constant 0 : index
    %17 = vector.load %arg6[%c0_6, %c0_7, %c0_8] : memref<1x1x16xf32, #tpu.memory_space<vmem>>, vector<1x1x16xf32>
    %18 = arith.maximumf %17, %2 : vector<1x1x16xf32>
    %c0_9 = arith.constant 0 : index
    %c0_10 = arith.constant 0 : index
    %c0_11 = arith.constant 0 : index
    %19 = vector.load %arg8[%c0_9, %c0_10, %c0_11] : memref<1x1x16xf32, #tpu.memory_space<vmem>>, vector<1x1x16xf32>
    %20 = arith.subf %17, %18 : vector<1x1x16xf32>
    %21 = math.exp %20 : vector<1x1x16xf32>
    %22 = arith.mulf %19, %21 : vector<1x1x16xf32>
    %23 = arith.subf %2, %18 : vector<1x1x16xf32>
    %24 = math.exp %23 : vector<1x1x16xf32>
    %25 = arith.mulf %13, %24 : vector<1x1x16xf32>
    %26 = arith.addf %22, %25 : vector<1x1x16xf32>
    %c0_12 = arith.constant 0 : index
    %c0_13 = arith.constant 0 : index
    %c0_14 = arith.constant 0 : index
    %27 = vector.load %arg8[%c0_12, %c0_13, %c0_14] : memref<1x1x16xf32, #tpu.memory_space<vmem>>, vector<1x1x16xf32>
    tpu.vector_store %arg8[%c0_12, %c0_13, %c0_14], %26 {strides = array<i32>} : memref<1x1x16xf32, #tpu.memory_space<vmem>>, vector<1x1x16xf32>,
    %28 = arith.cmpf ogt, %2, %17 : vector<1x1x16xf32>
    %c32_i32_15 = arith.constant 32 : i32
    %29 = arith.muli %arg2, %c32_i32_15 : i32
    %30 = vector.broadcast %29 : i32 to vector<1x16xi32>
    %31 = arith.addi %10, %30 : vector<1x16xi32>
    %32 = vector.shape_cast %31 : vector<1x16xi32> to vector<1x1x16xi32>
    %c0_16 = arith.constant 0 : index
    %c0_17 = arith.constant 0 : index
    %c0_18 = arith.constant 0 : index
    %33 = vector.load %arg7[%c0_16, %c0_17, %c0_18] : memref<1x1x16xi32, #tpu.memory_space<vmem>>, vector<1x1x16xi32>
    %34 = arith.select %28, %32, %33 : vector<1x1x16xi1>, vector<1x1x16xi32>
    %c0_19 = arith.constant 0 : index
    %c0_20 = arith.constant 0 : index
    %c0_21 = arith.constant 0 : index
    %35 = vector.load %arg7[%c0_19, %c0_20, %c0_21] : memref<1x1x16xi32, #tpu.memory_space<vmem>>, vector<1x1x16xi32>
    tpu.vector_store %arg7[%c0_19, %c0_20, %c0_21], %34 {strides = array<i32>} : memref<1x1x16xi32, #tpu.memory_space<vmem>>, vector<1x1x16xi32>,
    %c0_22 = arith.constant 0 : index
    %c0_23 = arith.constant 0 : index
    %c0_24 = arith.constant 0 : index
    %36 = vector.load %arg6[%c0_22, %c0_23, %c0_24] : memref<1x1x16xf32, #tpu.memory_space<vmem>>, vector<1x1x16xf32>
    tpu.vector_store %arg6[%c0_22, %c0_23, %c0_24], %18 {strides = array<i32>} : memref<1x1x16xf32, #tpu.memory_space<vmem>>, vector<1x1x16xf32>,
    %c0_i32_25 = arith.constant 0 : i32
    %37 = arith.cmpi eq, %arg2, %c0_i32_25 : i32
    %38 = arith.extui %37 : i1 to i32
    %c0_i32_26 = arith.constant 0 : i32
    %39 = arith.cmpi ne, %38, %c0_i32_26 : i32
    scf.if %39 {
      %c0_27 = arith.constant 0 : index
      %c0_28 = arith.constant 0 : index
      %c0_29 = arith.constant 0 : index
      %40 = vector.load %arg7[%c0_27, %c0_28, %c0_29] : memref<1x1x16xi32, #tpu.memory_space<vmem>>, vector<1x1x16xi32>
      %c0_30 = arith.constant 0 : index
      %c0_31 = arith.constant 0 : index
      %c0_32 = arith.constant 0 : index
      %41 = vector.load %arg4[%c0_30, %c0_31, %c0_32] : memref<1x1x16xi32, #tpu.memory_space<vmem>>, vector<1x1x16xi32>
      tpu.vector_store %arg4[%c0_30, %c0_31, %c0_32], %40 {strides = array<i32>} : memref<1x1x16xi32, #tpu.memory_space<vmem>>, vector<1x1x16xi32>,
      %c0_33 = arith.constant 0 : index
      %c0_34 = arith.constant 0 : index
      %c0_35 = arith.constant 0 : index
      %42 = vector.load %arg8[%c0_33, %c0_34, %c0_35] : memref<1x1x16xf32, #tpu.memory_space<vmem>>, vector<1x1x16xf32>
      %43 = math.log %42 : vector<1x1x16xf32>
      %cst_36 = arith.constant 0.000000e+00 : f32
      %44 = vector.broadcast %cst_36 : f32 to vector<1x1x16xf32>
      %45 = arith.subf %44, %43 : vector<1x1x16xf32>
      %c0_37 = arith.constant 0 : index
      %c0_38 = arith.constant 0 : index
      %c0_39 = arith.constant 0 : index
      %46 = vector.load %arg5[%c0_37, %c0_38, %c0_39] : memref<1x1x16xf32, #tpu.memory_space<vmem>>, vector<1x1x16xf32>
      tpu.vector_store %arg5[%c0_37, %c0_38, %c0_39], %45 {strides = array<i32>} : memref<1x1x16xf32, #tpu.memory_space<vmem>>, vector<1x1x16xf32>,
    } else {
    }
    return
  }
  func.func @transform_0(%arg0: i32, %arg1: i32, %arg2: i32) -> (i32, i32, i32) {
    %c0_i32 = arith.constant 0 : i32
    return %arg0, %arg2, %arg1 : i32, i32, i32
  }
  func.func @transform_1(%arg0: i32, %arg1: i32, %arg2: i32) -> (i32, i32, i32) {
    %c0_i32 = arith.constant 0 : i32
    %c0_i32_0 = arith.constant 0 : i32
    return %arg0, %c0_i32, %arg1 : i32, i32, i32
  }
  func.func @transform_2(%arg0: i32, %arg1: i32, %arg2: i32) -> (i32, i32, i32) {
    %c0_i32 = arith.constant 0 : i32
    %c0_i32_0 = arith.constant 0 : i32
    return %arg0, %c0_i32, %arg1 : i32, i32, i32
  }
}

</mosaic_0001>

<bundles_post_ra>
// kernel: tpu_custom_call.1
= control target key start
LH: loop header
LB: loop body
LE: loop exit
PB: predicated region body
PF: predicated region fallthrough
CT: control target
= control target key end

     0   :  { %8 = vsyncpa [#allocation6], 0  ;;  %s832_s0 = inlined_call_operand.vmem [shape: f32[2,32,16], index: 0, kind: input, shape index: {}]   ;;  %s833_s1 = inlined_call_operand.hbm [shape: s32[2,1,16], index: 1, kind: output, shape index: {0}]   ;;  %s834_s2 = inlined_call_operand.hbm [shape: f32[2,1,16], index: 2, kind: output, shape index: {1}]  }
   0x1   :  { %10 = vsyncpa [#allocation6 + $0x1], 0 }
   0x2   :  { %11 = vsyncpa [#allocation8], 0 }
   0x3   :  { %13 = vsyncpa [#allocation8 + $0x1], 0  ;;  %s670_s9 = smov 0   ;;  %s672_s10 = smov 0  }
   0x4   :  { %s674_s11 = smov 0   ;;  %s676_s12 = smov 0  }
   0x5   :  { %s678_s13 = smov 0   ;;  %s680_s14 = smov 0  }
   0x6 LB: > { %s453_s15 = sadd.s32 4294967295, %s648_s14   ;;  %s454_s16 = sadd.s32 4294967294, %s648_s14   ;;  %s648_s14 = sphi %s680_s14, %s19_s14   ;;  %s644_s13 = sphi %s678_s13, %s841_s13   ;;  %s640_s12 = sphi %s676_s12, %s840_s12   ;;  %s636_s11 = sphi %s674_s11, %s839_s11   ;;  %s632_s10 = sphi %s672_s10, %s838_s10   ;;  %s628_s9 = sphi %s670_s9, %s837_s9  }
   0x7   : > { %s38_s17 = sadd.s32 1, %s644_s13  ;;  %s77_s18 = sadd.s32 1, %s636_s11 }
   0x8   : > { %p40_p0 = scmp.ge.s32.totalorder %s38_s17, 2  ;;  %p87_p1 = scmp.ne.s32.totalorder %s636_s11, %s632_s10 }
   0x9   : > { %p88_p2 = scmp.eq.s32.totalorder %s453_s15, 1  ;;  %p93_p3 = scmp.ne.s32.totalorder %s632_s10, %s628_s9 }
   0xa   : > { %s843_s17 = smov (%p40_p0, %s38_s17), 0  ;;  %p94_p5 = scmp.eq.s32.totalorder %s454_s16, 1 }
   0xb   : > { %p710_p4 = por %p88_p2, %p87_p1  ;;  %s72_s20 = ssub.s32 %s644_s13, %s843_s17 }
   0xc   : > { %p457_p6 = scmp.ge.s32.totalorder %s648_s14, 1  ;;  %p75_p7 = scmp.eq.s32.totalorder %s72_s20, 0 }
   0xd   : > { %p717_p8 = por %p94_p5, %p93_p3  ;;  %p156_p9 = scmp.lt.s32.totalorder %s648_s14, 3 }
   0xe   : > { %s723_s22 = scalar_select %p75_p7, %s636_s11, %s77_s18  }
   0xf   : > { %p157_p10 = pnand %p457_p6, %p156_p9 }
  0x10   : > { %p189_p11 = scmp.lt.s32.totalorder (!%p157_p10), %s640_s12, 1  ;;  %s743_s28 = sand.u32 (!%p157_p10), 1, %s632_s10  }
  0x11   : > { %160 = sbr.rel (%p157_p10) target bundleno = 139 (0x8b), region = 24  ;;  %s181_s29 = scalar_lea.vmem (!%p157_p10), [#allocation5], %s743_s28 }
  0x12   : > { %s334_s30 = sshll.u32 (!%p157_p10), %s181_s29, 4  ;;  %s460_s3 = sshll.u32 (!%p157_p10), %s640_s12, 4  ;;  %s752_s30 = int_to_ptr.vmem [resolvable:$true] %s334_s30 }
  0x13   : > { %s759_s6 = scalar_lea.hbm (!%p157_p10), %s833_s1, %s460_s3  ;;  %s317_s7 = scalar_lea.sflag (!%p157_p10), [#allocation6], %s743_s28 }
  0x14   : > { %s542_s8 = scalar_lea.vmem (!%p157_p10), %s752_s30, 16  ;;  %s653_s15 = smov (!%p157_p10), [#allocation5]  }
  0x15   : > { %p543_p12 = scmp.ne.s32.totalorder (!%p157_p10), %s752_s30, %s542_s8  ;;  %s546_s16 = sshll.u32 (!%p157_p10), %s653_s15, 4  ;;  %s547_s16 = int_to_ptr.vmem [resolvable:$false] %s546_s16 }
  0x16   : > { %vm280_vm0 = vcmask 122880   ;;  %v650_v0 = vmov -inf   ;;  %v651_v1 = vmov 0   ;;  %s190_s23 = scalar_select %p189_p11, %s640_s12, 1  ;;  %v652_v2 = vmov 0.0  }
  0x17   : > { %281 = vst.msk [vmem:[#allocation2] sm:$0x1] %vm280_vm0, %v650_v0  ;;  %282 = vst.msk [vmem:[#allocation3] sm:$0x1] %vm280_vm0, %v651_v1  ;;  %vm205_vm1 = vcmask 130048   ;;  %v223_v16 = vlaneseq  ;;  %p544_p13 = pnand %p543_p12, %p710_p4  ;;  %s548_s18 = scalar_lea.vmem %s547_s16, 32 }
  0x18   : > { %283 = vst.msk [vmem:[#allocation4] sm:$0x1] %vm280_vm0, %v652_v2  ;;  %s464_s24 = sshll.u32 %s190_s23, 5  ;;  %p549_p1 = scmp.lt.s32.totalorder %s752_s30, %s547_s16 }
  0x19   : > { %s199_s27 = scalar_lea.vmem %s832_s0, %s464_s24  ;;  %v224_v19 = vshrl.u32 %v223_v16, 7  ;;  %p545_p0 = pneg %p544_p13 }
  0x1a   : > { %v201_v3 = vld [vmem:[%s199_s27] sm:$0xff]  ;;  %v202_v4 = vld [vmem:[%s199_s27 + $0x8] sm:$0xff]  ;;  %v203_v5 = vld [vmem:[%s199_s27 + $0x10] sm:$0xff]  ;;  %p550_p2 = scmp.lt.s32.totalorder %s548_s18, %s542_s8 }
  0x1b   : > { %v204_v6 = vld [vmem:[%s199_s27 + $0x18] sm:$0xff]  ;;  %v206_v7 = vsel %vm205_vm1, %v201_v3, -inf  ;;  %v207_v8 = vsel %vm205_vm1, %v202_v4, -inf  ;;  %v208_v9 = vsel %vm205_vm1, %v203_v5, -inf  ;;  %v225_v23 = vadd.s32 8, %v224_v19 }
  0x1c   : > { %v209_v10 = vsel %vm205_vm1, %v204_v6, -inf  ;;  %v210_v11 = vmax.f32 %v206_v7, %v207_v8  ;;  %v226_v24 = vadd.s32 16, %v224_v19  ;;  %v227_v25 = vadd.s32 24, %v224_v19  ;;  %p551_p3 = por %p550_p2, %p549_p1 }
  0x1d   : > { %v211_v12 = vmax.f32 %v208_v9, %v209_v10 }
  0x1e   : > { %v284_v21 = vld [vmem:[#allocation2] sm:$0x1]  ;;  %v302_v53 = vld [vmem:[#allocation3] sm:$0x1]  ;;  %p552_p5 = pnand %p551_p3, %p545_p0 }
  0x1f   : > { %v212_v13 = vmax.f32 %v210_v11, %v211_v12 }
  0x21   : > { %v213_v14 = vrot.slane %v212_v13, 4 }
  0x23   : > { %v214_v15 = vmax.f32 %v212_v13, %v213_v14 }
  0x25   : > { %v215_v17 = vrot.slane %v214_v15, 2 }
  0x27   : > { %v216_v18 = vmax.f32 %v214_v15, %v215_v17 }
  0x29   : > { %v217_v20 = vrot.slane %v216_v18, 1 }
  0x2b   : > { %v218_v22 = vmax.f32 %v216_v18, %v217_v20 }
  0x2d   : > { %v285_v26 = vmax.f32 %v284_v21, %v218_v22  ;;  %v219_v27 = vsub.f32 %v201_v3, %v218_v22  ;;  %v220_v28 = vsub.f32 %v202_v4, %v218_v22  ;;  %v221_v29 = vsub.f32 %v203_v5, %v218_v22 }
  0x2e   : > { %v222_v30 = vsub.f32 %v204_v6, %v218_v22  ;;  %vm298_vm12 = vcmp.gt.f32.partialorder %v218_v22, %v284_v21 }
  0x2f   : > { %305 = vst.msk [vmem:[#allocation2] sm:$0x1] %vm280_vm0, %v285_v26  ;;  %vm228_vm2 = vcmp.ge.f32.partialorder %v219_v27, 0.0  ;;  %vm229_vm3 = vcmp.ge.f32.partialorder %v220_v28, 0.0  ;;  %vm230_vm4 = vcmp.ge.f32.partialorder %v221_v29, 0.0  ;;  %v287_v49 = vsub.f32 %v284_v21, %v285_v26 }
  0x30   : > { %vm231_vm5 = vcmp.ge.f32.partialorder %v222_v30, 0.0  ;;  %v232_v31 = vsel %vm228_vm2, %v224_v19, 32  ;;  %v233_v32 = vsel %vm229_vm3, %v225_v23, 32  ;;  %v234_v33 = vsel %vm230_vm4, %v226_v24, 32 }
  0x31   : > { %v235_v34 = vsel %vm231_vm5, %v227_v25, 32  ;;  %v236_v35 = vsel %vm205_vm1, %v232_v31, 2147483647  ;;  %v237_v36 = vsel %vm205_vm1, %v233_v32, 2147483647  ;;  %v291_v50 = vsub.f32 %v218_v22, %v285_v26 }
  0x32   : > { %v238_v37 = vsel %vm205_vm1, %v234_v33, 2147483647  ;;  %v239_v38 = vsel %vm205_vm1, %v235_v34, 2147483647  ;;  %vm240_vm6 = vcmp.lt.s32.totalorder %v236_v35, %v237_v36  ;;  %v255_v39 = vmul.f32 1.442695, %v219_v27 }
  0x33   : > { %v241_v40 = vsel %vm240_vm6, %v236_v35, %v237_v36  ;;  %vm242_vm7 = vcmp.lt.s32.totalorder %v238_v37, %v239_v38  ;;  %v257_v41 = vmul.f32 1.442695, %v220_v28  ;;  %v259_v43 = vmul.f32 1.442695, %v221_v29 }
  0x34   : > { %v243_v42 = vsel %vm242_vm7, %v238_v37, %v239_v38  ;;  %528 = vpow2.f32 %v255_v39  ;;  %v261_v44 = vmul.f32 1.442695, %v222_v30  ;;  %v288_v55 = vmul.f32 1.442695, %v287_v49 }
  0x35   : > { %vm244_vm8 = vcmp.lt.s32.totalorder %v241_v40, %v243_v42  ;;  %530 = vpow2.f32 %v257_v41  ;;  %v292_v57 = vmul.f32 1.442695, %v291_v50 }
  0x36   : > { %v245_v45 = vsel %vm244_vm8, %v241_v40, %v243_v42  ;;  %532 = vpow2.f32 %v259_v43 }
  0x37   : > { %v246_v46 = vrot.slane %v245_v45, 4  ;;  %534 = vpow2.f32 %v261_v44 }
  0x38   : > { %536 = vpow2.f32 %v288_v55 }
  0x39   : > { %vm247_vm9 = vcmp.lt.s32.totalorder %v245_v45, %v246_v46  ;;  %538 = vpow2.f32 %v292_v57 }
  0x3a   : > { %v248_v47 = vsel %vm247_vm9, %v245_v45, %v246_v46 }
  0x3b   : > { %v249_v48 = vrot.slane %v248_v47, 2 }
  0x3d   : > { %vm250_vm10 = vcmp.lt.s32.totalorder %v248_v47, %v249_v48 }
  0x3e   : > { %v251_v51 = vsel %vm250_vm10, %v248_v47, %v249_v48 }
  0x3f   : > { %v252_v52 = vrot.slane %v251_v51, 1 }
  0x41   : > { %v529_v54 = vpop.eup %528  ;;  %vm253_vm11 = vcmp.lt.s32.totalorder %v251_v51, %v252_v52 }
  0x42   : > { %v531_v56 = vpop.eup %530  ;;  %v254_v58 = vsel %vm253_vm11, %v251_v51, %v252_v52  ;;  %v263_v59 = vsel %vm205_vm1, %v529_v54, 0.0 }
  0x43   : > { %v533_v60 = vpop.eup %532  ;;  %v303_v61 = vsel %vm298_vm12, %v254_v58, %v302_v53  ;;  %v264_v62 = vsel %vm205_vm1, %v531_v56, 0.0 }
  0x44   : > { %v535_v63 = vpop.eup %534  ;;  %304 = vst.msk [vmem:[#allocation3] sm:$0x1] %vm280_vm0, %v303_v61  ;;  %v265_v0 = vadd.f32 %v264_v62, %v263_v59  ;;  %v266_v1 = vsel %vm205_vm1, %v533_v60, 0.0 }
  0x45   : > { %v268_v2 = vsel %vm205_vm1, %v535_v63, 0.0 }
  0x46   : > { %v267_v3 = vadd.f32 %v266_v1, %v265_v0 }
  0x48   : > { %v269_v4 = vadd.f32 %v268_v2, %v267_v3 }
  0x4a   : > { %v270_v5 = vrot.slane %v269_v4, 4 }
  0x4b   : > { %v309_v6 = vld [vmem:[#allocation3] sm:$0x1] }
  0x4c   : > { %310 = vst.msk [vmem:[%s181_s29] sm:$0x1] %vm280_vm0, %v309_v6  ;;  %v271_v7 = vadd.f32 %v270_v5, %v269_v4 }
  0x4d   : > { %555 = shalt.err (!%p552_p5)
}
  0x4e   : > { %s556_s20 = scalar_lea.hbm %s759_s6, 16  ;;  %s560_s25 = scalar_lea.hbm %s833_s1, 32 }
  0x4f   : > { %p557_p6 = scmp.ne.s32.totalorder %s759_s6, %s556_s20  ;;  %p561_p10 = scmp.lt.s32.totalorder %s759_s6, %s833_s1 }
  0x50   : > { %p562_p11 = scmp.lt.s32.totalorder %s560_s25, %s556_s20 }
  0x51   : > { %p558_p7 = pnand %p557_p6, %p710_p4 }
  0x52   : > { %p563_p12 = por %p562_p11, %p561_p10 }
  0x53   : > { %p559_p9 = pneg %p558_p7 }
  0x55   : > { %p564_p13 = pnand %p563_p12, %p559_p9 }
  0x57   : > { %567 = shalt.err (!%p564_p13)
}
  0x58   : > { %465 = dma.vmem_to_hbm [thread:$0]  (%p710_p4), %s752_s30, 16, %s759_s6, %s317_s7   ;;  %v272_v8 = vrot.slane %v271_v7, 2  ;;  %v537_v10 = vpop.eup %536  ;;  %v286_v13 = vld [vmem:[#allocation4] sm:$0x1] }
  0x59   : > { %v539_v12 = vpop.eup %538  ;;  %v290_v15 = vmul.f32 %v537_v10, %v286_v13  ;;  %s187_s29 = scalar_lea.vmem [#allocation7], %s743_s28  ;;  %s346_s6 = scalar_lea.hbm %s834_s2, %s460_s3 }
  0x5a   : > { %v273_v9 = vadd.f32 %v272_v8, %v271_v7  ;;  %s348_s4 = sshll.u32 %s187_s29, 4  ;;  %s321_s7 = scalar_lea.sflag [#allocation8], %s743_s28  ;;  %s785_s4 = int_to_ptr.vmem [resolvable:$true] %s348_s4 }
  0x5b   : > { %s568_s8 = scalar_lea.vmem %s785_s4, 16  ;;  %s654_s15 = smov [#allocation7]  }
  0x5c   : > { %v274_v11 = vrot.slane %v273_v9, 1  ;;  %p569_p0 = scmp.ne.s32.totalorder %s785_s4, %s568_s8  ;;  %s572_s16 = sshll.u32 %s654_s15, 4  ;;  %s573_s16 = int_to_ptr.vmem [resolvable:$false] %s572_s16 }
  0x5d   : > { %s574_s18 = scalar_lea.vmem %s573_s16, 32  ;;  %p575_p3 = scmp.lt.s32.totalorder %s785_s4, %s573_s16 }
  0x5e   : > { %v275_v14 = vadd.f32 %v274_v11, %v273_v9  ;;  %p570_p1 = pnand %p569_p0, %p710_p4  ;;  %p576_p5 = scmp.lt.s32.totalorder %s574_s18, %s568_s8 }
  0x60   : > { %v294_v16 = vmul.f32 %v539_v12, %v275_v14  ;;  %p571_p2 = pneg %p570_p1  ;;  %p577_p6 = por %p576_p5, %p575_p3 }
  0x62   : > { %v295_v17 = vadd.f32 %v294_v16, %v290_v15  ;;  %p578_p7 = pnand %p577_p6, %p571_p2 }
  0x64   : > { %297 = vst.msk [vmem:[#allocation4] sm:$0x1] %vm280_vm0, %v295_v17 }
  0x6b   : > { %v311_v18 = vld [vmem:[#allocation4] sm:$0x1] }
  0x6c   : > { %540 = vlog2.f32 %v311_v18 }
  0x79   : > { %v541_v19 = vpop.eup %540 }
  0x7a   : > { %v313_v20 = vmul.f32 0.6931472, %v541_v19 }
  0x7c   : > { %v314_v21 = vsub.f32 0.0, %v313_v20 }
  0x7e   : > { %315 = vst.msk [vmem:[%s187_s29] sm:$0x1] %vm280_vm0, %v314_v21 }
  0x7f   : > { %581 = shalt.err (!%p578_p7)
}
  0x80   : > { %s582_s12 = scalar_lea.hbm %s346_s6, 16  ;;  %s586_s20 = scalar_lea.hbm %s834_s2, 32 }
  0x81   : > { %p583_p9 = scmp.ne.s32.totalorder %s346_s6, %s582_s12  ;;  %p587_p12 = scmp.lt.s32.totalorder %s346_s6, %s834_s2 }
  0x82   : > { %p588_p13 = scmp.lt.s32.totalorder %s586_s20, %s582_s12 }
  0x83   : > { %p584_p10 = pnand %p583_p9, %p710_p4 }
  0x84   : > { %p589_p0 = por %p588_p13, %p587_p12 }
  0x85   : > { %p585_p11 = pneg %p584_p10 }
  0x87   : > { %p590_p1 = pnand %p589_p0, %p585_p11 }
  0x89   : > { %593 = shalt.err (!%p590_p1)
}
  0x8a   : > { %466 = dma.vmem_to_hbm [thread:$0]  (%p710_p4), %s785_s4, 16, %s346_s6, %s321_s7  }
  0x8b PF: > { %p476_p2 = scmp.ge.s32.totalorder %s648_s14, 2  ;;  %s360_s25 = sand.u32 1, %s628_s9  }
  0x8c   : > { %s361_s26 = scalar_lea.sflag [#allocation6], %s360_s25 }
  0x8d   : > { %p470_p3 = pnand %p476_p2, %p717_p8 }
  0x8f   : > { %p471_p5 = pneg %p470_p3 }
  0x91   : > { %619 = dma.done.wait (%p471_p5), %s361_s26, 16  }
  0x92   : > { %621 = vsyncadd (%p471_p5), %s361_s26, 4294967280  ;;  %s369_s27 = scalar_lea.sflag [#allocation8], %s360_s25 }
  0x93   : > { %623 = dma.done.wait (%p471_p5), %s369_s27, 16  }
  0x94   : > { %625 = vsyncadd (%p471_p5), %s369_s27, 4294967280  ;;  %s19_s14 = sadd.s32 1, %s648_s14   ;;  %s837_s9 = smov %s632_s10 }
  0x95   : > { %p16_p6 = scmp.ge.s32.totalorder %s19_s14, 4   ;;  %s838_s10 = smov %s636_s11 }
  0x96   : > { %s839_s11 = smov %s723_s22  ;;  %s840_s12 = smov %s644_s13 }
  0x97   : > { %s841_s13 = smov %s843_s17  ;;  %18 = sbr.rel (!%p16_p6) target bundleno = 6 (0x6), region = 84 }
  0x9c   :  { %373 = vsyncpa [#allocation6], 1 }
  0x9d   :  { %375 = vsyncpa [#allocation6 + $0x1], 1 }
  0x9e   :  { %376 = vsyncpa [#allocation8], 1 }
  0x9f   :  { %378 = vsyncpa [#allocation8 + $0x1], 1 }

</bundles_post_ra>
